<compile_context>
chip_gen: v6e
topology: v6e:2x2x1
jax: 0.10.0
libtpu: 0.0.40
codegen_flags: <defaults>
</compile_context>

<pallas_src>
import functools
import math

import jax
import jax.numpy as jnp
from jax.experimental import pallas as pl
from jax.experimental.pallas import tpu as pltpu

SUBLANE = 8
LANE = 128
MAX_BLOCKDIAG_BATCH = 8   # beyond this, (B*Np)^2 att is no longer "free"


def _round_up(x, m):
    return (x + m - 1) // m * m


# --------------------------------------------------------------------------
# Kernels
# --------------------------------------------------------------------------
def gcn_blockdiag_kernel(x_ref, w_ref, att_ref, b_ref, o_ref):
    # x_ref:   (B*Np, Fin)   bf16  (batch folded into M)
    # w_ref:   (Fin, Fp)     bf16
    # att_ref: (B*Np, B*Np)  bf16, block-diagonal (exact zeros off-diagonal)
    # b_ref:   (1, Fp)       f32
    # o_ref:   (B*Np, Fp)    f32
    support = jnp.dot(x_ref[...], w_ref[...], preferred_element_type=jnp.float32)
    out = jnp.dot(att_ref[...], support.astype(att_ref.dtype),
                  preferred_element_type=jnp.float32)
    o_ref[...] = (out + b_ref[...]).astype(o_ref.dtype)


def gcn_loop_kernel(x_ref, w_ref, att_ref, b_ref, o_ref, *, batch, rows_per_batch):
    # Fallback for larger B: att is (Np, Np); apply per batch element and store
    # each sublane-aligned row block directly (no concat, stores overlap MXU).
    support = jnp.dot(x_ref[...], w_ref[...], preferred_element_type=jnp.float32)
    att = att_ref[...]
    bias = b_ref[...]
    for b in range(batch):
        blk = support[b * rows_per_batch:(b + 1) * rows_per_batch, :].astype(att.dtype)
        o_ref[b * rows_per_batch:(b + 1) * rows_per_batch, :] = (
            jnp.dot(att, blk, preferred_element_type=jnp.float32) + bias
        ).astype(o_ref.dtype)


# --------------------------------------------------------------------------
# Parameter preparation (done ONCE, outside the per-call forward)
# --------------------------------------------------------------------------
def prepare_params(weight, att, bias, batch, node_n, compute_dtype=jnp.bfloat16):
    """Pad/cast the static GCN parameters for the kernel.

    Returns (w_p, att_p, b_p):
      w_p   : (Fin, Fp)            compute_dtype
      att_p : (B*Np, B*Np) block-diagonal if batch <= MAX_BLOCKDIAG_BATCH,
              else (Np, Np)        compute_dtype
      b_p   : (1, Fp)              float32 (epilogue stays f32; v5e has no bf16 VPU)
    """
    fin, fout = weight.shape
    np_ = _round_up(node_n, SUBLANE)
    fp = _round_up(fout, LANE)

    w_p = jnp.pad(weight, ((0, 0), (0, fp - fout))).astype(compute_dtype)

    # Exact-zero padding of att (rows/cols N..Np).
    att_pad = jnp.zeros((np_, np_), weight.dtype).at[:node_n, :node_n].set(att)
    if batch <= MAX_BLOCKDIAG_BATCH:
        # Exact block-diagonal replication (eye entries are 0.0 / 1.0 -> exact).
        att_pad = jnp.kron(jnp.eye(batch, dtype=att_pad.dtype), att_pad)
    att_p = att_pad.astype(compute_dtype)

    b_p = jnp.pad(bias, (0, fp - fout)).reshape(1, fp).astype(jnp.float32)
    return w_p, att_p, b_p


# --------------------------------------------------------------------------
# Forward (jitted end-to-end: x pad/reshape + kernel + slice fuse together)
# --------------------------------------------------------------------------
@functools.partial(jax.jit, static_argnames=("out_features",))
def graph_convolution(x, w_p, att_p, b_p, *, out_features):
    """x: [B, N, Fin] f32; prepared params from prepare_params -> [B, N, Fout] f32."""
    B, N, Fin = x.shape
    Np = _round_up(N, SUBLANE)
    Fp = w_p.shape[1]
    M = B * Np

    # Zero-padded rows / lanes never contaminate the valid region (sliced off).
    x_p = jnp.pad(x, ((0, 0), (0, Np - N), (0, 0))).reshape(M, Fin).astype(w_p.dtype)

    if att_p.shape[0] == M:            # block-diagonal path (small B)
        kernel = gcn_blockdiag_kernel
    else:                              # per-batch loop with direct stores
        kernel = functools.partial(gcn_loop_kernel, batch=B, rows_per_batch=Np)

    vmem = pltpu.MemorySpace.VMEM
    out_p = pl.pallas_call(
        kernel,
        out_shape=jax.ShapeDtypeStruct((M, Fp), jnp.float32),
        in_specs=[pl.BlockSpec(memory_space=vmem)] * 4,
        out_specs=pl.BlockSpec(memory_space=vmem),
    )(x_p, w_p, att_p, b_p)

    return out_p.reshape(B, Np, Fp)[:, :N, :out_features]


# --------------------------------------------------------------------------
# Init mirroring GraphConvolution.reset_parameters()
# --------------------------------------------------------------------------
def init_params(key, in_features, out_features, node_n):
    stdv = 1.0 / math.sqrt(out_features)
    kw, ka, kb = jax.random.split(key, 3)
    weight = jax.random.uniform(
        kw, (in_features, out_features), jnp.float32, minval=-stdv, maxval=stdv)
    att = jax.random.uniform(
        ka, (node_n, node_n), jnp.float32, minval=-stdv, maxval=stdv)
    bias = jax.random.uniform(
        kb, (out_features,), jnp.float32, minval=-stdv, maxval=stdv)
    return weight, att, bias


if __name__ == "__main__":
    B = 2
    node_n = 13
    in_features = 16
    out_features = 32

    key = jax.random.PRNGKey(0)
    kx, kp = jax.random.split(key)

    x = jax.random.normal(kx, (B, node_n, in_features), dtype=jnp.float32)
    weight, att, bias = init_params(kp, in_features, out_features, node_n)

    # Parameter padding / bf16 cast done once.
    w_p, att_p, b_p = prepare_params(weight, att, bias, B, node_n)

    out = graph_convolution(x, w_p, att_p, b_p, out_features=out_features)
    out = jax.block_until_ready(out)

    # Pure-JAX f32 reference (same association as the PyTorch forward).
    ref = jnp.einsum("nm,bmf->bnf", att, x @ weight) + bias
    assert out.shape == (B, node_n, out_features)
    # bf16 matmul operands with f32 accumulation -> relax tolerance to ~1e-2.
    assert jnp.allclose(out, ref, atol=2e-2, rtol=2e-2)

    print("KERNEL_OK")
</pallas_src>

<mosaic_0001>
module attributes {stable_mosaic.version = 11 : i64} {
  func.func @gcn_blockdiag_kernel(%arg0: memref<32x16xbf16, #tpu.memory_space<vmem>>, %arg1: memref<16x128xbf16, #tpu.memory_space<vmem>>, %arg2: memref<32x32xbf16, #tpu.memory_space<vmem>>, %arg3: memref<1x128xf32, #tpu.memory_space<vmem>>, %arg4: memref<32x128xf32, #tpu.memory_space<vmem>>) attributes {dimension_semantics = [], scalar_prefetch = 0 : i64, scratch_operands = 0 : i64, tpu.core_type = #tpu.core_type<tc>} {
    %c0 = arith.constant 0 : index
    %c0_0 = arith.constant 0 : index
    %0 = vector.load %arg0[%c0, %c0_0] : memref<32x16xbf16, #tpu.memory_space<vmem>>, vector<32x16xbf16>
    %c0_1 = arith.constant 0 : index
    %c0_2 = arith.constant 0 : index
    %1 = vector.load %arg1[%c0_1, %c0_2] : memref<16x128xbf16, #tpu.memory_space<vmem>>, vector<16x128xbf16>
    %cst = arith.constant dense<0.000000e+00> : vector<32x128xf32>
    %2 = tpu.matmul %0, %1, %cst {dimension_numbers = #tpu.dot_dimension_numbers<[1], [0], [0], [1], [0, 0, 1, 1], [], []>} : vector<32x16xbf16>, vector<16x128xbf16>, vector<32x128xf32> -> vector<32x128xf32>
    %c0_3 = arith.constant 0 : index
    %c0_4 = arith.constant 0 : index
    %3 = vector.load %arg2[%c0_3, %c0_4] : memref<32x32xbf16, #tpu.memory_space<vmem>>, vector<32x32xbf16>
    %4 = arith.truncf %2 : vector<32x128xf32> to vector<32x128xbf16>
    %cst_5 = arith.constant dense<0.000000e+00> : vector<32x128xf32>
    %5 = tpu.matmul %3, %4, %cst_5 {dimension_numbers = #tpu.dot_dimension_numbers<[1], [0], [0], [1], [0, 0, 1, 1], [], []>} : vector<32x32xbf16>, vector<32x128xbf16>, vector<32x128xf32> -> vector<32x128xf32>
    %c0_6 = arith.constant 0 : index
    %c0_7 = arith.constant 0 : index
    %6 = vector.load %arg3[%c0_6, %c0_7] : memref<1x128xf32, #tpu.memory_space<vmem>>, vector<1x128xf32>
    %7 = vector.broadcast %6 : vector<1x128xf32> to vector<32x128xf32>
    %8 = arith.addf %5, %7 : vector<32x128xf32>
    %c0_8 = arith.constant 0 : index
    %c0_9 = arith.constant 0 : index
    %9 = vector.load %arg4[%c0_8, %c0_9] : memref<32x128xf32, #tpu.memory_space<vmem>>, vector<32x128xf32>
    tpu.vector_store %arg4[%c0_8, %c0_9], %8 {strides = array<i32>} : memref<32x128xf32, #tpu.memory_space<vmem>>, vector<32x128xf32>,
    return
  }
}

</mosaic_0001>

<bundles_post_ra>
// kernel: graph_convolution.1
= control target key start
LH: loop header
LB: loop body
LE: loop exit
PB: predicated region body
PF: predicated region fallthrough
CT: control target
= control target key end

     0   :  { %vm40_vm0 = vcmask 130048   ;;  %vm119_vm1 = vcmask 261120   ;;  %s274_s1 = inlined_call_operand.vmem [shape: bf16[16,128], index: 1, kind: input, shape index: {}]   ;;  %s275_s0 = inlined_call_operand.vmem [shape: bf16[32,16], index: 0, kind: input, shape index: {}]   ;;  %s276_s2 = inlined_call_operand.vmem [shape: bf16[32,32], index: 2, kind: input, shape index: {}]   ;;  %s277_s3 = inlined_call_operand.vmem [shape: f32[1,128], index: 3, kind: input, shape index: {}]   ;;  %s278_s4 = inlined_call_operand.vmem [shape: f32[32,128], index: 4, kind: output, shape index: {}]  }
   0x1   :  { %v214_v0 = vld [vmem:[%s274_s1] sm:$0xff]   ;;  %v216_v2 = vld [vmem:[%s275_s0 + $0x8] sm:$0xff]  }
   0x2   :  { %v215_v1 = vld [vmem:[%s275_s0] sm:$0xff]   ;;  %200 = vmatprep.subr.bf16.mxu0 %v214_v0  ;;  %v218_v10 = vld [vmem:[%s276_s2 + $0x8] sm:$0xff]  }
   0x3   :  { %201 = vmatpush3.bf16.msra.mxu0 %v214_v0  ;;  %202 = vmatprep.mubr.msk.bf16.mxu0 %vm40_vm0, %v215_v1  ;;  %v217_v3 = vld [vmem:[%s276_s2] sm:$0xff]  }
   0x4   :  { %210 = vmatprep.mubr.msk.bf16.mxu1 %vm119_vm1, %v217_v3  ;;  %v188_v11 = vld [vmem:[%s277_s3] ss:$0 sm:$0xff] }
   0x6   :  { %203 = vmatmul.mubr.msk.bf16.vlgmr.msra.gmra.mxu0 %vm40_vm0, %v216_v2 }
  0xc6   :  { %v204_v4 = vpop.f32.mrf.mxu0 }
  0xc8   :  { %v81_v5 = vpop.f32.mrf.mxu0 }
  0xca   :  { %v205_v6 = vpop.f32.mrf.mxu0 }
  0xcb   :  { %v101_v7 = vpack.c.bf16 %v205_v6, %v204_v4 }
  0xcc   :  { %v84_v8 = vpop.f32.mrf.mxu0 }
  0xcd   :  { %v100_v9 = vpack.c.bf16 %v84_v8, %v81_v5  ;;  %206 = vmatprep.subr.bf16.mxu1 %v101_v7 }
  0xce   :  { %207 = vmatpush3.bf16.msra.mxu1 %v101_v7 }
  0xcf   :  { %208 = vmatprep.subr.bf16.mxu1 %v100_v9 }
  0xd2   :  { %209 = vmatpush3.bf16.msra.mxu1 %v100_v9 }
  0xd5   :  { %211 = vmatmul.mubr.msk.bf16.vlgmr.msra.gmra.mxu1 %vm119_vm1, %v218_v10 }
 0x195   :  { %v212_v12 = vpop.f32.mrf.mxu1 }
 0x196   :  { %v169_v13 = vadd.f32 %v212_v12, %v188_v11 }
 0x197   :  { %v160_v14 = vpop.f32.mrf.mxu1 }
 0x198   :  { %177 = vst [vmem:[%s278_s4 + $0x10] sm:$0xff] %v169_v13  ;;  %v161_v15 = vadd.f32 %v188_v11, %v160_v14 }
 0x199   :  { %v213_v16 = vpop.f32.mrf.mxu1 }
 0x19a   :  { %175 = vst [vmem:[%s278_s4] sm:$0xff] %v161_v15  ;;  %v172_v17 = vadd.f32 %v213_v16, %v188_v11 }
 0x19b   :  { %v163_v18 = vpop.f32.mrf.mxu1 }
 0x19c   :  { %178 = vst [vmem:[%s278_s4 + $0x18] sm:$0xff] %v172_v17  ;;  %v164_v19 = vadd.f32 %v188_v11, %v163_v18 }
 0x19e   :  { %176 = vst [vmem:[%s278_s4 + $0x8] sm:$0xff] %v164_v19 }

</bundles_post_ra>
